<compile_context>
chip_gen: v7x
topology: tpu7x:2x2x1
jax: 0.10.0
libtpu: 0.0.40
codegen_flags: <defaults>
</compile_context>

<pallas_src>
import functools
import math

import jax
import jax.numpy as jnp
from jax.experimental import pallas as pl
from jax.experimental.pallas import tpu as pltpu

PAD_IDX = 0
LN_EPS = 1e-5
MXU_DTYPE = jnp.bfloat16   # MXU input / stored-weight dtype; jnp.float32 for exact


# ------------------------------ tiling helpers ------------------------------

def _row_tile(n, cap=512):
    """Row (sublane) tile: multiple of 8 dividing n (or n itself)."""
    if n <= cap:
        return n
    for t in range(cap - cap % 8, 7, -8):
        if n % t == 0:
            return t
    return n


def _row_tile_multi(n, cap=512):
    """Row tile giving >=2 grid points when n allows (v7x has 2 TensorCores)."""
    if n >= 16:
        cap = min(cap, max(8, (n // 2) // 8 * 8))
    return _row_tile(n, cap)


def _col_tile(n, cap=512):
    """Lane tile: prefer 256-aligned (v6e/v7x MXU), then 128-aligned divisors."""
    if n <= cap:
        return n
    for t in range(cap - cap % 256, 255, -256):
        if n % t == 0:
            return t
    for t in range(cap - cap % 128, 127, -128):
        if n % t == 0:
            return t
    return n


def _layernorm_math(x, g, b):
    mean = jnp.mean(x, axis=-1, keepdims=True)
    var = jnp.mean(jnp.square(x - mean), axis=-1, keepdims=True)
    return (x - mean) * jax.lax.rsqrt(var + LN_EPS) * g + b


# ----------------------------- Pallas kernels -------------------------------

def _embed_ln_kernel(emb_ref, pe_ref, g_ref, b_ref, o_ref):
    # out = LayerNorm(embedding + positional_encoding)
    o_ref[0] = _layernorm_math(emb_ref[0] + pe_ref[0], g_ref[...], b_ref[...])


def pallas_embed_ln(emb, pe, gamma, beta):
    b, s, e = emb.shape
    return pl.pallas_call(
        _embed_ln_kernel,
        out_shape=jax.ShapeDtypeStruct((b, s, e), jnp.float32),
        grid=(b,),
        in_specs=[
            pl.BlockSpec((1, s, e), lambda i: (i, 0, 0)),
            pl.BlockSpec((1, s, e), lambda i: (0, 0, 0)),
            pl.BlockSpec((1, e), lambda i: (0, 0)),
            pl.BlockSpec((1, e), lambda i: (0, 0)),
        ],
        out_specs=pl.BlockSpec((1, s, e), lambda i: (i, 0, 0)),
        compiler_params=pltpu.CompilerParams(dimension_semantics=("parallel",)),
    )(emb, pe, gamma, beta)


def _ln_kernel(x_ref, g_ref, b_ref, o_ref):
    o_ref[...] = _layernorm_math(x_ref[...], g_ref[...], b_ref[...])


def pallas_layernorm(x2d, gamma, beta):
    n, e = x2d.shape
    tm = _row_tile_multi(n, cap=1024)
    return pl.pallas_call(
        _ln_kernel,
        out_shape=jax.ShapeDtypeStruct((n, e), jnp.float32),
        grid=(n // tm,),
        in_specs=[
            pl.BlockSpec((tm, e), lambda i: (i, 0)),
            pl.BlockSpec((1, e), lambda i: (0, 0)),
            pl.BlockSpec((1, e), lambda i: (0, 0)),
        ],
        out_specs=pl.BlockSpec((tm, e), lambda i: (i, 0)),
        compiler_params=pltpu.CompilerParams(dimension_semantics=("parallel",)),
    )(x2d, gamma, beta)


def _ln_linear_kernel(x_ref, g_ref, b_ref, w_ref, bias_ref, o_ref):
    # out = LayerNorm(x) @ W + bias   (final decoder LN fused into fc_out)
    xn = _layernorm_math(x_ref[...], g_ref[...], b_ref[...])
    o_ref[...] = jnp.dot(xn.astype(MXU_DTYPE), w_ref[...],
                         preferred_element_type=jnp.float32) + bias_ref[...]


def pallas_ln_linear(x2d, gamma, beta, w, bias):
    # TODO(synk): for very large E add a K grid axis with an f32 accumulator
    # (the LN prologue would then become a separate pre-pass).
    n, k = x2d.shape
    out = w.shape[1]
    tm = _row_tile_multi(n, cap=512)
    tn = _col_tile(out, cap=512)
    return pl.pallas_call(
        _ln_linear_kernel,
        out_shape=jax.ShapeDtypeStruct((n, out), jnp.float32),
        grid=(n // tm, out // tn),
        in_specs=[
            pl.BlockSpec((tm, k), lambda i, j: (i, 0)),
            pl.BlockSpec((1, k), lambda i, j: (0, 0)),
            pl.BlockSpec((1, k), lambda i, j: (0, 0)),
            pl.BlockSpec((k, tn), lambda i, j: (0, j)),
            pl.BlockSpec((1, tn), lambda i, j: (0, j)),
        ],
        out_specs=pl.BlockSpec((tm, tn), lambda i, j: (i, j)),
        compiler_params=pltpu.CompilerParams(
            dimension_semantics=("parallel", "parallel")),
    )(x2d, gamma, beta, w, bias)


def _ffn_ln_kernel(x_ref, w1_ref, b1_ref, w2_ref, b2_ref, g_ref, bln_ref,
                   o_ref, acc_ref):
    # out = LayerNorm(x + relu(x@W1 + b1) @ W2 + b2), hid dim tiled on axis 1.
    j = pl.program_id(1)

    @pl.when(j == 0)
    def _():
        acc_ref[...] = jnp.zeros_like(acc_ref)

    x = x_ref[...]
    h = jnp.dot(x.astype(MXU_DTYPE), w1_ref[...],
                preferred_element_type=jnp.float32) + b1_ref[...]
    h = jnp.maximum(h, 0.0)
    acc_ref[...] += jnp.dot(h.astype(MXU_DTYPE), w2_ref[...],
                            preferred_element_type=jnp.float32)

    @pl.when(j == pl.num_programs(1) - 1)
    def _():
        o_ref[...] = _layernorm_math(x + acc_ref[...] + b2_ref[...],
                                     g_ref[...], bln_ref[...])


def fused_ffn_block(x, w1, b1, w2, b2, gamma, beta):
    b, s, e = x.shape
    hid = w1.shape[1]
    x2 = x.reshape(-1, e)
    n = x2.shape[0]
    tm = _row_tile_multi(n, cap=512)
    th = _col_tile(hid, cap=512)
    out = pl.pallas_call(
        _ffn_ln_kernel,
        out_shape=jax.ShapeDtypeStruct((n, e), jnp.float32),
        grid=(n // tm, hid // th),
        in_specs=[
            pl.BlockSpec((tm, e), lambda i, j: (i, 0)),
            pl.BlockSpec((e, th), lambda i, j: (0, j)),
            pl.BlockSpec((1, th), lambda i, j: (0, j)),
            pl.BlockSpec((th, e), lambda i, j: (j, 0)),
            pl.BlockSpec((1, e), lambda i, j: (0, 0)),
            pl.BlockSpec((1, e), lambda i, j: (0, 0)),
            pl.BlockSpec((1, e), lambda i, j: (0, 0)),
        ],
        out_specs=pl.BlockSpec((tm, e), lambda i, j: (i, 0)),
        scratch_shapes=[pltpu.VMEM((tm, e), jnp.float32)],
        compiler_params=pltpu.CompilerParams(
            dimension_semantics=("parallel", "arbitrary")),
    )(x2, w1, b1, w2, b2, gamma, beta)
    return out.reshape(b, s, e)


def _attn_block_kernel(*refs, num_heads, scale, causal, use_mask, tq, sk):
    # Fused: Q proj (per q-tile) + K/V proj (once per batch, kept in VMEM)
    #        + per-head SDPA + output proj + residual + LayerNorm.
    (xq_ref, xkv_ref, wq_ref, bq_ref, wkv_ref, bkv_ref,
     wo_ref, bo_ref, g_ref, bln_ref) = refs[:10]
    idx = 10
    m_ref = None
    if use_mask:
        m_ref = refs[idx]; idx += 1
    o_ref = refs[idx]
    kv_sc = refs[idx + 1]     # (Sk, 2E) bf16 scratch: K | V
    ctx_sc = refs[idx + 2]    # (tq, E)  f32 scratch: per-head context slab

    qi = pl.program_id(1)
    e = xq_ref.shape[-1]
    dh = e // num_heads

    # K/V projection once per batch element (q-tile 0), kept resident in VMEM.
    @pl.when(qi == 0)
    def _():
        xkv = xkv_ref[0]                                   # (Sk, E) f32
        kv = jnp.dot(xkv.astype(MXU_DTYPE), wkv_ref[...],
                     preferred_element_type=jnp.float32) + bkv_ref[...]
        kv_sc[...] = kv.astype(kv_sc.dtype)

    xq = xq_ref[0]                                         # (tq, E) f32
    q = jnp.dot(xq.astype(MXU_DTYPE), wq_ref[...],
                preferred_element_type=jnp.float32) + bq_ref[...]

    k = kv_sc[:, :e]                                       # (Sk, E) bf16
    v = kv_sc[:, e:]

    if use_mask:
        bias = m_ref[...]                                  # (tq, Sk) additive mask
    elif causal:
        # generate_square_subsequent_mask, built in-kernel (no HBM mask DMA)
        rows = jax.lax.broadcasted_iota(jnp.int32, (tq, sk), 0) + qi * tq
        cols = jax.lax.broadcasted_iota(jnp.int32, (tq, sk), 1)
        bias = jnp.where(cols <= rows, 0.0, -jnp.inf).astype(jnp.float32)
    else:
        bias = None

    for h in range(num_heads):                             # static unroll
        sl = slice(h * dh, (h + 1) * dh)
        s = jax.lax.dot_general(q[:, sl].astype(MXU_DTYPE), k[:, sl],
                                (((1,), (1,)), ((), ())),
                                preferred_element_type=jnp.float32) * scale
        if bias is not None:
            s = s + bias
        s_max = jnp.max(s, axis=-1, keepdims=True)
        p = jnp.exp(s - s_max)
        p = p / jnp.sum(p, axis=-1, keepdims=True)         # exact softmax denom
        ctx_sc[:, sl] = jnp.dot(p.astype(MXU_DTYPE), v[:, sl],
                                preferred_element_type=jnp.float32)

    proj = jnp.dot(ctx_sc[...].astype(MXU_DTYPE), wo_ref[...],
                   preferred_element_type=jnp.float32) + bo_ref[...]
    o_ref[0] = _layernorm_math(xq + proj, g_ref[...], bln_ref[...])


def fused_attention_block(x_q, x_kv, ap, gamma, beta, mask, num_heads, *,
                          causal=False):
    """One pallas_call per attention sub-block; grid = (batch, Sq tiles)."""
    b, sq, e = x_q.shape
    sk = x_kv.shape[1]
    dh = e // num_heads
    use_mask = mask is not None
    assert not (use_mask and causal)
    tq = _row_tile(sq, cap=256)
    nq = sq // tq

    kernel = functools.partial(
        _attn_block_kernel, num_heads=num_heads, scale=1.0 / math.sqrt(dh),
        causal=causal, use_mask=use_mask, tq=tq, sk=sk)

    in_specs = [
        pl.BlockSpec((1, tq, e), lambda bi, qi: (bi, qi, 0)),   # q-side rows
        pl.BlockSpec((1, sk, e), lambda bi, qi: (bi, 0, 0)),    # full kv-side
        pl.BlockSpec((e, e), lambda bi, qi: (0, 0)),            # Wq (bf16)
        pl.BlockSpec((1, e), lambda bi, qi: (0, 0)),            # bq
        pl.BlockSpec((e, 2 * e), lambda bi, qi: (0, 0)),        # Wkv (bf16)
        pl.BlockSpec((1, 2 * e), lambda bi, qi: (0, 0)),        # bkv
        pl.BlockSpec((e, e), lambda bi, qi: (0, 0)),            # Wo (bf16)
        pl.BlockSpec((1, e), lambda bi, qi: (0, 0)),            # bo
        pl.BlockSpec((1, e), lambda bi, qi: (0, 0)),            # LN gamma
        pl.BlockSpec((1, e), lambda bi, qi: (0, 0)),            # LN beta
    ]
    args = [x_q, x_kv, ap["wq"], ap["bq"], ap["wkv"], ap["bkv"],
            ap["wo"], ap["bo"], gamma, beta]
    if use_mask:
        in_specs.append(pl.BlockSpec((tq, sk), lambda bi, qi: (qi, 0)))
        args.append(mask)

    return pl.pallas_call(
        kernel,
        out_shape=jax.ShapeDtypeStruct((b, sq, e), jnp.float32),
        grid=(b, nq),
        in_specs=in_specs,
        out_specs=pl.BlockSpec((1, tq, e), lambda bi, qi: (bi, qi, 0)),
        scratch_shapes=[
            pltpu.VMEM((sk, 2 * e), MXU_DTYPE),   # resident K|V per batch elem
            pltpu.VMEM((tq, e), jnp.float32),     # per-head context slab
        ],
        compiler_params=pltpu.CompilerParams(
            dimension_semantics=("parallel", "arbitrary")),
    )(*args)


# --------------------------- transformer pieces -----------------------------

def encoder_layer(x, p, src_mask, num_heads):
    x = fused_attention_block(x, x, p["self_attn"], p["norm1_g"], p["norm1_b"],
                              src_mask, num_heads)
    x = fused_ffn_block(x, p["w1"], p["b1"], p["w2"], p["b2"],
                        p["norm2_g"], p["norm2_b"])
    return x


def decoder_layer(x, memory, p, tgt_mask, memory_mask, num_heads, *, tgt_causal):
    x = fused_attention_block(x, x, p["self_attn"], p["norm1_g"], p["norm1_b"],
                              None if tgt_causal else tgt_mask, num_heads,
                              causal=tgt_causal)
    x = fused_attention_block(x, memory, p["cross_attn"], p["norm2_g"],
                              p["norm2_b"], memory_mask, num_heads)
    x = fused_ffn_block(x, p["w1"], p["b1"], p["w2"], p["b2"],
                        p["norm3_g"], p["norm3_b"])
    return x


def generate_positional_encoding(block_size, embedding_dim):
    position = jnp.arange(block_size, dtype=jnp.float32)[:, None]
    div_term = jnp.exp(jnp.arange(0, embedding_dim, 2, dtype=jnp.float32)
                       * (-math.log(10000.0) / embedding_dim))
    pe = jnp.zeros((block_size, embedding_dim), dtype=jnp.float32)
    pe = pe.at[:, 0::2].set(jnp.sin(position * div_term))
    pe = pe.at[:, 1::2].set(jnp.cos(position * div_term))
    return pe[None]   # (1, S, E)


def gpt_forward(params, src, tgt, src_mask=None, tgt_mask=None,
                memory_mask=None, *, num_heads, tgt_causal=False):
    b, ss = src.shape
    st = tgt.shape[1]
    e = params["embedding"].shape[1]

    pe = generate_positional_encoding(max(ss, st), e)
    # TODO(synk): embedding gather is data-dependent indexing; kept as JAX glue.
    src_emb = jnp.take(params["embedding"], src, axis=0)
    tgt_emb = jnp.take(params["embedding"], tgt, axis=0)
    src_x = pallas_embed_ln(src_emb, pe[:, :ss], params["norm_g"], params["norm_b"])
    tgt_x = pallas_embed_ln(tgt_emb, pe[:, :st], params["norm_g"], params["norm_b"])

    x = src_x
    for lp in params["encoder_layers"]:
        x = encoder_layer(x, lp, src_mask, num_heads)
    memory = pallas_layernorm(x.reshape(-1, e), params["enc_norm_g"],
                              params["enc_norm_b"]).reshape(b, ss, e)

    y = tgt_x
    for lp in params["decoder_layers"]:
        y = decoder_layer(y, memory, lp, tgt_mask, memory_mask, num_heads,
                          tgt_causal=tgt_causal)

    # final decoder LayerNorm fused into the fc_out matmul kernel
    logits = pallas_ln_linear(y.reshape(-1, e), params["dec_norm_g"],
                              params["dec_norm_b"], params["fc_w"], params["fc_b"])
    return logits.reshape(b, st, -1)


# ------------------------------ param init ----------------------------------

def xavier_uniform(key, shape):
    fan_out, fan_in = shape
    bound = math.sqrt(6.0 / (fan_in + fan_out))
    return jax.random.uniform(key, shape, jnp.float32, -bound, bound)


def _lin_wt(key, out_dim, in_dim):
    # weights stored pre-transposed (In, Out) and in the MXU input dtype (bf16)
    return xavier_uniform(key, (out_dim, in_dim)).T.astype(MXU_DTYPE)


def init_attn_params(key, e):
    kq, kk, kv, ko = jax.random.split(key, 4)
    return {"wq": _lin_wt(kq, e, e),
            "bq": jnp.zeros((1, e), jnp.float32),
            "wkv": jnp.concatenate([_lin_wt(kk, e, e), _lin_wt(kv, e, e)], axis=1),
            "bkv": jnp.zeros((1, 2 * e), jnp.float32),
            "wo": _lin_wt(ko, e, e),
            "bo": jnp.zeros((1, e), jnp.float32)}


def _ln(e):
    return jnp.ones((1, e), jnp.float32), jnp.zeros((1, e), jnp.float32)


def init_encoder_layer(key, e):
    k1, k2, k3 = jax.random.split(key, 3)
    p = {"self_attn": init_attn_params(k1, e),
         "w1": _lin_wt(k2, 4 * e, e), "b1": jnp.zeros((1, 4 * e), jnp.float32),
         "w2": _lin_wt(k3, e, 4 * e), "b2": jnp.zeros((1, e), jnp.float32)}
    p["norm1_g"], p["norm1_b"] = _ln(e)
    p["norm2_g"], p["norm2_b"] = _ln(e)
    return p


def init_decoder_layer(key, e):
    k1, k2, k3, k4 = jax.random.split(key, 4)
    p = {"self_attn": init_attn_params(k1, e),
         "cross_attn": init_attn_params(k2, e),
         "w1": _lin_wt(k3, 4 * e, e), "b1": jnp.zeros((1, 4 * e), jnp.float32),
         "w2": _lin_wt(k4, e, 4 * e), "b2": jnp.zeros((1, e), jnp.float32)}
    p["norm1_g"], p["norm1_b"] = _ln(e)
    p["norm2_g"], p["norm2_b"] = _ln(e)
    p["norm3_g"], p["norm3_b"] = _ln(e)
    return p


def init_params(key, vocab_size, e, num_layers):
    keys = jax.random.split(key, 2 + 2 * num_layers)
    emb = 0.02 * jax.random.normal(keys[0], (vocab_size, e), jnp.float32)
    emb = emb.at[PAD_IDX].set(0.0)                      # padding_idx row = 0
    params = {"embedding": emb,
              "fc_w": _lin_wt(keys[1], vocab_size, e),
              "fc_b": jnp.zeros((1, vocab_size), jnp.float32)}
    params["norm_g"], params["norm_b"] = _ln(e)
    params["enc_norm_g"], params["enc_norm_b"] = _ln(e)
    params["dec_norm_g"], params["dec_norm_b"] = _ln(e)
    params["encoder_layers"] = [init_encoder_layer(keys[2 + i], e)
                                for i in range(num_layers)]
    params["decoder_layers"] = [init_decoder_layer(keys[2 + num_layers + i], e)
                                for i in range(num_layers)]
    return params


# --------------------------------- main --------------------------------------

if __name__ == "__main__":
    # 128-aligned E and vocab keep every output slab lane-dense and MXU-friendly.
    vocab_size, embedding_dim, num_heads, num_layers, block_size = 128, 128, 4, 2, 16
    batch = 2

    root = jax.random.PRNGKey(0)
    k_params, k_src, k_tgt = jax.random.split(root, 3)
    params = init_params(k_params, vocab_size, embedding_dim, num_layers)

    src = jax.random.randint(k_src, (batch, block_size), 0, vocab_size, dtype=jnp.int32)
    tgt = jax.random.randint(k_tgt, (batch, block_size), 0, vocab_size, dtype=jnp.int32)

    # Decoder causal mask (nn.Transformer.generate_square_subsequent_mask) is
    # built inside the attention kernel via broadcasted_iota (tgt_causal=True)
    # instead of DMAing a (S,S) -inf matrix.
    logits = gpt_forward(params, src, tgt, num_heads=num_heads, tgt_causal=True)
    logits = jax.block_until_ready(logits)

    assert logits.shape == (batch, block_size, vocab_size)
    assert bool(jnp.all(jnp.isfinite(logits)))
    print("KERNEL_OK")
</pallas_src>

<mosaic_0001>
module attributes {stable_mosaic.version = 11 : i64} {
  func.func @_embed_ln_kernel(%arg0: i32, %arg1: memref<1x16x128xf32, #tpu.memory_space<vmem>>, %arg2: memref<1x16x128xf32, #tpu.memory_space<vmem>>, %arg3: memref<1x128xf32, #tpu.memory_space<vmem>>, %arg4: memref<1x128xf32, #tpu.memory_space<vmem>>, %arg5: memref<1x16x128xf32, #tpu.memory_space<vmem>>) attributes {dimension_semantics = [#tpu.dimension_semantics<parallel>], iteration_bounds = array<i64: 2>, scalar_prefetch = 0 : i64, scratch_operands = 0 : i64, tpu.core_type = #tpu.core_type<tc>, window_params = [{transform_indices = @transform_0, window_bounds = array<i64: 1, 16, 128>}, {pipeline_mode = #tpu.pipeline_mode<synchronous>, transform_indices = @transform_1, window_bounds = array<i64: 1, 16, 128>}, {pipeline_mode = #tpu.pipeline_mode<synchronous>, transform_indices = @transform_2, window_bounds = array<i64: 1, 128>}, {pipeline_mode = #tpu.pipeline_mode<synchronous>, transform_indices = @transform_3, window_bounds = array<i64: 1, 128>}, {transform_indices = @transform_4, window_bounds = array<i64: 1, 16, 128>}]} {
    %c0 = arith.constant 0 : index
    %c0_0 = arith.constant 0 : index
    %c0_1 = arith.constant 0 : index
    %0 = vector.load %arg1[%c0, %c0_0, %c0_1] : memref<1x16x128xf32, #tpu.memory_space<vmem>>, vector<1x16x128xf32>
    %1 = vector.shape_cast %0 : vector<1x16x128xf32> to vector<16x128xf32>
    %c0_2 = arith.constant 0 : index
    %c0_3 = arith.constant 0 : index
    %c0_4 = arith.constant 0 : index
    %2 = vector.load %arg2[%c0_2, %c0_3, %c0_4] : memref<1x16x128xf32, #tpu.memory_space<vmem>>, vector<1x16x128xf32>
    %3 = vector.shape_cast %2 : vector<1x16x128xf32> to vector<16x128xf32>
    %4 = arith.addf %1, %3 : vector<16x128xf32>
    %c0_5 = arith.constant 0 : index
    %c0_6 = arith.constant 0 : index
    %5 = vector.load %arg3[%c0_5, %c0_6] : memref<1x128xf32, #tpu.memory_space<vmem>>, vector<1x128xf32>
    %c0_7 = arith.constant 0 : index
    %c0_8 = arith.constant 0 : index
    %6 = vector.load %arg4[%c0_7, %c0_8] : memref<1x128xf32, #tpu.memory_space<vmem>>, vector<1x128xf32>
    %cst = arith.constant dense<0.000000e+00> : vector<16xf32>
    %7 = vector.multi_reduction <add>, %4, %cst [1] : vector<16x128xf32> to vector<16xf32>
    %8 = vector.shape_cast %7 : vector<16xf32> to vector<16x1xf32>
    %cst_9 = arith.constant 1.280000e+02 : f32
    %9 = vector.broadcast %cst_9 : f32 to vector<16x1xf32>
    %10 = arith.divf %8, %9 : vector<16x1xf32>
    %11 = vector.broadcast %10 : vector<16x1xf32> to vector<16x128xf32>
    %12 = arith.subf %4, %11 : vector<16x128xf32>
    %13 = arith.mulf %12, %12 : vector<16x128xf32>
    %cst_10 = arith.constant dense<0.000000e+00> : vector<16xf32>
    %14 = vector.multi_reduction <add>, %13, %cst_10 [1] : vector<16x128xf32> to vector<16xf32>
    %15 = vector.shape_cast %14 : vector<16xf32> to vector<16x1xf32>
    %cst_11 = arith.constant 1.280000e+02 : f32
    %16 = vector.broadcast %cst_11 : f32 to vector<16x1xf32>
    %17 = arith.divf %15, %16 : vector<16x1xf32>
    %18 = vector.broadcast %10 : vector<16x1xf32> to vector<16x128xf32>
    %19 = arith.subf %4, %18 : vector<16x128xf32>
    %cst_12 = arith.constant 9.99999974E-6 : f32
    %20 = vector.broadcast %cst_12 : f32 to vector<16x1xf32>
    %21 = arith.addf %17, %20 : vector<16x1xf32>
    %22 = math.rsqrt %21 : vector<16x1xf32>
    %23 = vector.broadcast %22 : vector<16x1xf32> to vector<16x128xf32>
    %24 = arith.mulf %19, %23 : vector<16x128xf32>
    %25 = vector.broadcast %5 : vector<1x128xf32> to vector<16x128xf32>
    %26 = arith.mulf %24, %25 : vector<16x128xf32>
    %27 = vector.broadcast %6 : vector<1x128xf32> to vector<16x128xf32>
    %28 = arith.addf %26, %27 : vector<16x128xf32>
    %c0_13 = arith.constant 0 : index
    %c0_14 = arith.constant 0 : index
    %c0_15 = arith.constant 0 : index
    %29 = vector.load %arg5[%c0_13, %c0_14, %c0_15] : memref<1x16x128xf32, #tpu.memory_space<vmem>>, vector<1x16x128xf32>
    %30 = vector.shape_cast %29 : vector<1x16x128xf32> to vector<16x128xf32>
    %31 = vector.shape_cast %28 : vector<16x128xf32> to vector<1x16x128xf32>
    tpu.vector_store %arg5[%c0_13, %c0_14, %c0_15], %31 {strides = array<i32>} : memref<1x16x128xf32, #tpu.memory_space<vmem>>, vector<1x16x128xf32>,
    return
  }
  func.func @transform_0(%arg0: i32) -> (i32, i32, i32) {
    %c0_i32 = arith.constant 0 : i32
    %c0_i32_0 = arith.constant 0 : i32
    %c0_i32_1 = arith.constant 0 : i32
    return %arg0, %c0_i32, %c0_i32_0 : i32, i32, i32
  }
  func.func @transform_1(%arg0: i32) -> (i32, i32, i32) {
    %c0_i32 = arith.constant 0 : i32
    %c0_i32_0 = arith.constant 0 : i32
    %c0_i32_1 = arith.constant 0 : i32
    %c0_i32_2 = arith.constant 0 : i32
    return %c0_i32, %c0_i32_0, %c0_i32_1 : i32, i32, i32
  }
  func.func @transform_2(%arg0: i32) -> (i32, i32) {
    %c0_i32 = arith.constant 0 : i32
    %c0_i32_0 = arith.constant 0 : i32
    %c0_i32_1 = arith.constant 0 : i32
    return %c0_i32, %c0_i32_0 : i32, i32
  }
  func.func @transform_3(%arg0: i32) -> (i32, i32) {
    %c0_i32 = arith.constant 0 : i32
    %c0_i32_0 = arith.constant 0 : i32
    %c0_i32_1 = arith.constant 0 : i32
    return %c0_i32, %c0_i32_0 : i32, i32
  }
  func.func @transform_4(%arg0: i32) -> (i32, i32, i32) {
    %c0_i32 = arith.constant 0 : i32
    %c0_i32_0 = arith.constant 0 : i32
    %c0_i32_1 = arith.constant 0 : i32
    return %arg0, %c0_i32, %c0_i32_0 : i32, i32, i32
  }
}

</mosaic_0001>

<bundles_post_ra>
// kernel: tpu_custom_call.1
= control target key start
LH: loop header
LB: loop body
LE: loop exit
PB: predicated region body
PF: predicated region fallthrough
CT: control target
= control target key end

     0   :  { %9 = vsyncpa [#allocation3], 0  ;;  %s841_s0 = inlined_call_operand.hbm [shape: f32[2,16,128], index: 0, kind: input, shape index: {}]   ;;  %s842_s1 = inlined_call_operand.hbm [shape: f32[1,16,128], index: 1, kind: input, shape index: {}]   ;;  %s843_s2 = inlined_call_operand.vmem [shape: f32[1,128], index: 2, kind: input, shape index: {}]   ;;  %s844_s3 = inlined_call_operand.vmem [shape: f32[1,128], index: 3, kind: input, shape index: {}]   ;;  %s845_s4 = inlined_call_operand.hbm [shape: f32[2,16,128], index: 4, kind: output, shape index: {}]  }
   0x1   :  { %11 = vsyncpa [#allocation3 + $0x1], 0 }
   0x2   :  { %12 = vsyncpa [#allocation6], 0 }
   0x3   :  { %13 = vsyncpa [#allocation4], 0 }
   0x4   :  { %15 = vsyncpa [#allocation4 + $0x1], 0  ;;  %s624_s15 = smov 0   ;;  %s626_s16 = smov 0  }
   0x5   :  { %s628_s17 = smov 0   ;;  %s630_s18 = smov 0  }
   0x6 LB: > { %s645_s19 = sadd.s32 4294967295, %s590_s18   ;;  %s377_s20 = sadd.s32 4294967294, %s590_s18   ;;  %s590_s18 = sphi %s630_s18, %s865_s18   ;;  %s586_s17 = sphi %s628_s17, %s864_s17   ;;  %s582_s16 = sphi %s626_s16, %s863_s16   ;;  %s578_s15 = sphi %s624_s15, %s862_s15  }
   0x7   : > { %p41_p0 = scmp.ne.s32.totalorder %s582_s16, %s578_s15  ;;  %p846_p1 = scmp.eq.s32.totalorder %s645_s19, 0 }
   0x8   : > { %p134_p3 = scmp.eq.s32.totalorder %s377_s20, 1  ;;  %p378_p5 = scmp.ge.s32.totalorder %s590_s18, 1 }
   0x9   : > { %p654_p4 = por %p846_p1, %p41_p0  ;;  %p141_p7 = scmp.lt.s32.totalorder %s590_s18, 3 }
   0xa   : > { %p659_p6 = por %p134_p3, %p41_p0  ;;  %s592_s24 = smov [#allocation5]  }
   0xb   : > { %s849_s21 = scalar_select %p654_p4, 1, 0 }
   0xc   : > { %s850_s22 = scalar_select %p659_p6, 1, 0 }
   0xd   : > { %p664_p8 = pnand %p378_p5, %p141_p7  ;;  %s153_s25 = sshll.u32 %s592_s24, 4  ;;  %s668_s25 = int_to_ptr.vmem [resolvable:$true] %s153_s25 }
   0xe   : > { %s680_s27 = sadd.s32 1, %s590_s18   ;;  %s28_s28 = sadd.s32 1, %s586_s17 }
   0xf   : > { %s851_s23 = scalar_select %p664_p8, 1, 0 }
  0x10   : > { %p405_p9 = pneg %p664_p8  ;;  %s25_s29 = ssub.s32 %s590_s18, %s680_s27 }
  0x11   : > { %s462_s6 = scalar_lea.hbm %s842_s1, 256 }
  0x12   : > { %p675_p11 = pnand %p405_p9, %p846_p1  ;;  %p463_p12 = scmp.ne.s32.totalorder %s842_s1, %s462_s6 }
  0x13   : > { %p469_p5 = scmp.lt.u32.totalorder %s462_s6, %s842_s1 }
  0x14   : > { %p464_p13 = pneg %p675_p11 }
  0x16   : > { %p465_p0 = pnand %p464_p13, %p463_p12 }
  0x18   : > { %p466_p3 = pneg %p465_p0 }
  0x1a   : > { %p471_p7 = pnand %p469_p5, %p466_p3 }
  0x1c   : > { %474 = shalt.err (!%p471_p7)
}
  0x1d   : > { %s475_s11 = scalar_lea.vmem %s668_s25, 256  ;;  %p483_p2 = scmp.lt.s32.totalorder %s668_s25, %s668_s25 }
  0x1e   : > { %p476_p9 = scmp.ne.s32.totalorder %s668_s25, %s475_s11  ;;  %p484_p6 = scmp.lt.s32.totalorder %s475_s11, %s475_s11 }
  0x20   : > { %p478_p10 = pnand %p476_p9, %p464_p13  ;;  %p485_p4 = por %p484_p6, %p483_p2 }
  0x22   : > { %p479_p1 = pneg %p478_p10 }
  0x24   : > { %p486_p8 = pnand %p485_p4, %p479_p1 }
  0x26   : > { %489 = shalt.err (!%p486_p8)
}
  0x27   : > { %s593_s12 = smov 128   ;;  %s594_s13 = smov 8  }
  0x28   : > { %408 = dma.hbm_to_vmem [thread:$0]  (!%p675_p11), %s842_s1, 256, %s668_s25, [#allocation6], %s593_s12, %s593_s12, %s594_s13  }
  0x29   : > { %p26_p1 = scmp.eq.s32.totalorder %s25_s29, 0  ;;  %p35_p2 = scmp.ne.s32.totalorder %s586_s17, %s582_s16 }
  0x2a   : > { %p36_p4 = scmp.eq.s32.totalorder %s590_s18, 0  ;;  %p418_p6 = scmp.lt.s32.totalorder %s590_s18, 2 }
  0x2b   : > { %s714_s24 = scalar_select %p26_p1, %s586_s17, %s28_s28  }
  0x2c   : > { %p37_p8 = por %p36_p4, %p35_p2  ;;  %p853_p10 = scmp.eq.s32.totalorder %s645_s19, 1 }
  0x2d   : > { %s173_s26 = sand.u32 1, %s586_s17   ;;  %s395_s5 = sshll.u32 %s590_s18, 8 }
  0x2e   : > { %p718_p12 = por %p853_p10, %p35_p2  ;;  %s381_s6 = sshll.u32 %s173_s26, 4 }
  0x2f   : > { %s727_s9 = scalar_lea.hbm %s841_s0, %s395_s5  ;;  %s177_s25 = scalar_lea.vmem [#allocation2], %s381_s6 }
  0x30   : > { %s184_s28 = sshll.u32 %s177_s25, 4  ;;  %p729_p11 = pnand %p418_p6, %p37_p8  ;;  %s733_s28 = int_to_ptr.vmem [resolvable:$true] %s184_s28 }
  0x31   : > { %s735_s10 = scalar_lea.sflag [#allocation3], %s173_s26  ;;  %s490_s11 = scalar_lea.hbm %s727_s9, 256 }
  0x32   : > { %p491_p13 = scmp.ne.s32.totalorder %s727_s9, %s490_s11  ;;  %p492_p0 = pneg %p729_p11 }
  0x33   : > { %s495_s5 = scalar_lea.hbm %s841_s0, 512  ;;  %p496_p7 = scmp.lt.u32.totalorder %s727_s9, %s841_s0 }
  0x34   : > { %p493_p3 = pnand %p492_p0, %p491_p13  ;;  %p497_p9 = scmp.lt.u32.totalorder %s495_s5, %s490_s11 }
  0x35   : > { %p499_p2 = scmp.lt.u32.totalorder %s490_s11, %s727_s9 }
  0x36   : > { %p494_p5 = pneg %p493_p3  ;;  %p498_p1 = por %p497_p9, %p496_p7 }
  0x38   : > { %p500_p4 = por %p499_p2, %p498_p1 }
  0x3a   : > { %p501_p6 = pnand %p500_p4, %p494_p5 }
  0x3c   : > { %504 = shalt.err (!%p501_p6)
}
  0x3d   : > { %s505_s26 = scalar_lea.vmem %s733_s28, 256  ;;  %s595_s8 = smov [#allocation2]  }
  0x3e   : > { %p506_p8 = scmp.ne.s32.totalorder %s733_s28, %s505_s26  ;;  %s510_s25 = sshll.u32 %s595_s8, 4  ;;  %s511_s25 = int_to_ptr.vmem [resolvable:$false] %s510_s25 }
  0x3f   : > { %s512_s14 = scalar_lea.vmem %s511_s25, 512  ;;  %p513_p3 = scmp.lt.s32.totalorder %s733_s28, %s511_s25 }
  0x40   : > { %p508_p10 = pnand %p506_p8, %p492_p0  ;;  %p514_p7 = scmp.lt.s32.totalorder %s512_s14, %s505_s26 }
  0x42   : > { %p509_p13 = pneg %p508_p10  ;;  %p515_p9 = por %p514_p7, %p513_p3 }
  0x44   : > { %p516_p1 = pnand %p515_p9, %p509_p13 }
  0x46   : > { %519 = shalt.err (!%p516_p1)
}
  0x47   : > { %412 = dma.hbm_to_vmem [thread:$0]  (!%p729_p11), %s727_s9, 256, %s733_s28, %s735_s10, %s593_s12, %s593_s12, %s594_s13  }
  0x48   : > { %p856_p0 = scmp.ne.s32.totalorder %s851_s23, 0 }
  0x49   : > { %s769_s11 = sand.u32 (!%p856_p0), 1, %s582_s16   ;;  %p857_p5 = scmp.ne.s32.totalorder (!%p856_p0), %s849_s21, 0 }
  0x4a   : > { %196 = sbr.rel (%p856_p0) target bundleno = 419 (0x1a3), region = 36  ;;  %s385_s20 = sshll.u32 (!%p856_p0), %s769_s11, 4 }
  0x4b   : > { %s199_s5 = scalar_lea.sflag (!%p856_p0), [#allocation3], %s769_s11  ;;  %s202_s29 = scalar_lea.vmem (!%p856_p0), [#allocation2], %s385_s20 }
  0x51   : > { %565 = dma.done.wait (%p857_p5), %s199_s5, 256  }
  0x52   : > { %567 = vsyncadd (%p857_p5), %s199_s5, 4294967040  ;;  %p858_p11 = scmp.eq.s32.totalorder %s645_s19, 0 }
  0x54   : > { %569 = dma.done.wait (%p858_p11), [#allocation6], 256   ;;  %p859_p2 = pmov %p858_p11 }
  0x55   : > { %v231_v0 = vld [vmem:[%s202_s29] sm:$0xff]  ;;  %v232_v2 = vld [vmem:[%s202_s29 + $0x8] sm:$0xff]  ;;  %s396_s9 = sshll.u32 %s645_s19, 8  ;;  %s230_s28 = scalar_lea.vmem [#allocation7], %s385_s20 }
  0x56   : > { %571 = vsyncadd (%p859_p2), [#allocation6], 4294967040  ;;  %v233_v1 = vld [vmem:[#allocation5] sm:$0xff]  ;;  %v234_v4 = vld [vmem:[#allocation5 + $0x8] sm:$0xff]  ;;  %s294_s10 = sshll.u32 %s230_s28, 4  ;;  %s795_s26 = scalar_lea.hbm %s845_s4, %s396_s9  ;;  %s797_s10 = int_to_ptr.vmem [resolvable:$true] %s294_s10 }
  0x57   : > { %v235_v3 = vadd.f32 %v233_v1, %v231_v0  ;;  %v236_v5 = vadd.f32 %v234_v4, %v232_v2  ;;  %v388_v21 = vld [vmem:[%s843_s2] ss:$0 sm:$0xff]  ;;  %s281_s8 = scalar_lea.sflag [#allocation4], %s769_s11  ;;  %s520_s25 = scalar_lea.vmem %s797_s10, 256 }
  0x58   : > { %v389_v23 = vld [vmem:[%s844_s3] ss:$0 sm:$0xff]  ;;  %p521_p4 = scmp.ne.s32.totalorder %s797_s10, %s520_s25  ;;  %s596_s19 = smov [#allocation7]  }
  0x59   : > { %239 = vadd.xlane.f32.xlu0 %v235_v3  ;;  %s524_s14 = sshll.u32 %s596_s19, 4  ;;  %s525_s14 = int_to_ptr.vmem [resolvable:$false] %s524_s14 }
  0x5a   : > { %p522_p6 = pnand %p521_p4, %p718_p12  ;;  %s526_s20 = scalar_lea.vmem %s525_s14, 512 }
  0x5b   : > { %p527_p10 = scmp.lt.s32.totalorder %s797_s10, %s525_s14  ;;  %p528_p13 = scmp.lt.s32.totalorder %s526_s20, %s520_s25 }
  0x5c   : > { %p523_p8 = pneg %p522_p6 }
  0x5d   : > { %241 = vadd.xlane.f32.xlu0 %v236_v5  ;;  %p529_p3 = por %p528_p13, %p527_p10 }
  0x5f   : > { %p530_p7 = pnand %p529_p3, %p523_p8 }
  0xe6   : > { %v240_v6 = vpop.xlane.xlu0 %239 }
  0xe7   : > { %v244_v7 = vmul.f32 0.0078125, %v240_v6 }
  0xe9   : > { %v246_v8 = vsub.f32 %v235_v3, %v244_v7 }
  0xea   : > { %v242_v9 = vpop.xlane.xlu0 %241 }
  0xeb   : > { %v245_v10 = vmul.f32 0.0078125, %v242_v9  ;;  %v248_v11 = vmul.f32 %v246_v8, %v246_v8 }
  0xed   : > { %v247_v12 = vsub.f32 %v236_v5, %v245_v10  ;;  %250 = vadd.xlane.f32.xlu1 %v248_v11 }
  0xef   : > { %v249_v13 = vmul.f32 %v247_v12, %v247_v12 }
  0xf1   : > { %252 = vadd.xlane.f32.xlu1 %v249_v13 }
 0x17a   : > { %v251_v14 = vpop.xlane.xlu1 %250 }
 0x17b   : > { %v254_v15 = vmul.f32 0.0078125, %v251_v14 }
 0x17d   : > { %v256_v16 = vadd.f32 1e-05, %v254_v15 }
 0x17e   : > { %v253_v17 = vpop.xlane.xlu1 %252 }
 0x17f   : > { %458 = vrsqrt.f32 %v256_v16  ;;  %v255_v18 = vmul.f32 0.0078125, %v253_v17 }
 0x181   : > { %v257_v19 = vadd.f32 1e-05, %v255_v18 }
 0x183   : > { %460 = vrsqrt.f32 %v257_v19 }
 0x189   : > { %v459_v20 = vpop.eup %458 }
 0x18a   : > { %v260_v22 = vmul.f32 %v459_v20, %v246_v8 }
 0x18c   : > { %v268_v24 = vmul.f32 %v388_v21, %v260_v22 }
 0x18d   : > { %v461_v25 = vpop.eup %460 }
 0x18e   : > { %v276_v26 = vadd.f32 %v389_v23, %v268_v24  ;;  %v261_v27 = vmul.f32 %v461_v25, %v247_v12 }
 0x190   : > { %v269_v28 = vmul.f32 %v388_v21, %v261_v27  ;;  %278 = vst [vmem:[%s230_s28] sm:$0xff] %v276_v26 }
 0x192   : > { %v277_v29 = vadd.f32 %v389_v23, %v269_v28 }
 0x194   : > { %279 = vst [vmem:[%s230_s28 + $0x8] sm:$0xff] %v277_v29 }
 0x195   : > { %533 = shalt.err (!%p530_p7)
}
 0x196   : > { %s534_s5 = scalar_lea.hbm %s795_s26, 256  ;;  %s538_s23 = scalar_lea.hbm %s845_s4, 512 }
 0x197   : > { %p535_p9 = scmp.ne.s32.totalorder %s795_s26, %s534_s5  ;;  %p539_p5 = scmp.lt.u32.totalorder %s795_s26, %s845_s4 }
 0x198   : > { %p540_p11 = scmp.lt.u32.totalorder %s538_s23, %s534_s5  ;;  %p542_p4 = scmp.lt.u32.totalorder %s534_s5, %s795_s26 }
 0x199   : > { %p536_p1 = pnand %p535_p9, %p718_p12 }
 0x19a   : > { %p541_p2 = por %p540_p11, %p539_p5 }
 0x19b   : > { %p537_p0 = pneg %p536_p1 }
 0x19c   : > { %p543_p6 = por %p542_p4, %p541_p2 }
 0x19e   : > { %p544_p8 = pnand %p543_p6, %p537_p0 }
 0x1a0   : > { %547 = shalt.err (!%p544_p8)
}
 0x1a1   : > { %s597_s9 = smov 128   ;;  %s598_s28 = smov 8  }
 0x1a2   : > { %403 = dma.vmem_to_hbm [thread:$0]  (%p718_p12), %s797_s10, 256, %s795_s26, %s281_s8, %s597_s9, %s597_s9, %s598_s28  }
 0x1a3 PF: > { %s309_s6 = sand.u32 1, %s578_s15   ;;  %p860_p10 = scmp.ne.s32.totalorder %s850_s22, 0 }
 0x1a4   : > { %p861_p13 = scmp.ge.s32.totalorder %s590_s18, 2  ;;  %s310_s7 = scalar_lea.sflag [#allocation4], %s309_s6 }
 0x1a6   : > { %p414_p3 = pnand %p861_p13, %p860_p10 }
 0x1a8   : > { %573 = dma.done.wait (!%p414_p3), %s310_s7, 256  }
 0x1a9   : > { %575 = vsyncadd (!%p414_p3), %s310_s7, 4294967040  ;;  %p18_p7 = scmp.ge.s32.totalorder %s680_s27, 4   ;;  %s862_s15 = smov %s582_s16 }
 0x1aa   : > { %s863_s16 = smov %s586_s17  ;;  %s864_s17 = smov %s714_s24 }
 0x1ab   : > { %s865_s18 = smov %s680_s27  ;;  %20 = sbr.rel (!%p18_p7) target bundleno = 6 (0x6), region = 85 }
 0x1b2   :  { %315 = vsyncpa [#allocation3], 1 }
 0x1b3   :  { %317 = vsyncpa [#allocation3 + $0x1], 1 }
 0x1b4   :  { %318 = vsyncpa [#allocation6], 1 }
 0x1b5   :  { %319 = vsyncpa [#allocation4], 1 }
 0x1b6   :  { %321 = vsyncpa [#allocation4 + $0x1], 1 }

</bundles_post_ra>
